<compile_context>
chip_gen: v7x
topology: tpu7x:2x2x1
jax: 0.10.0
libtpu: 0.0.40
codegen_flags: <defaults>
</compile_context>

<pallas_src>
import functools

import jax
import jax.numpy as jnp
from jax.experimental import pallas as pl
from jax.experimental.pallas import tpu as pltpu

BN_EPS = 1e-5


def _choose_tile(n):
    # Full-array block when small (always a legal lane-dim block size); otherwise a
    # 512-lane tile (multiple of 128) so the grid gets several double-buffered steps.
    return n if n <= 512 else 512


# ----------------------------- pass 1: conv1 + BN partial statistics --------------
def _conv_bn_stats_kernel(x_ref, w1_ref, b1_ref, stats_ref, *, n_valid, tn):
    j = pl.program_id(1)
    x = x_ref[0]                                               # (C, tn)
    h = jnp.dot(w1_ref[...], x, preferred_element_type=jnp.float32) + b1_ref[...]
    # mask lanes that fall past the true point count (partial last tile)
    col = j * tn + jax.lax.broadcasted_iota(jnp.int32, h.shape, 1)
    hm = jnp.where(col < n_valid, h, 0.0)
    psum = jnp.sum(hm, axis=1, keepdims=True)                  # (C, 1)
    psq = jnp.sum(hm * hm, axis=1, keepdims=True)              # (C, 1)
    lane = jax.lax.broadcasted_iota(jnp.int32, (h.shape[0], 8), 1)
    stats_ref[0, 0, :, :] = (jnp.where(lane == 0, psum, 0.0)
                             + jnp.where(lane == 1, psq, 0.0))


# ----------------------------- pass 2: conv1 + BN apply + ReLU + conv2 ------------
def _conv_bn_relu_conv_kernel(x_ref, w1_ref, b1_ref, scale_ref, shift_ref,
                              w2_ref, b2_ref, out_ref):
    x = x_ref[0]                                               # (C, tn)
    h = jnp.dot(w1_ref[...], x, preferred_element_type=jnp.float32) + b1_ref[...]
    h = jnp.maximum(h * scale_ref[...] + shift_ref[...], 0.0)  # folded BN + ReLU
    y = jnp.dot(w2_ref[...], h, preferred_element_type=jnp.float32) + b2_ref[...]
    out_ref[0] = y.astype(out_ref.dtype)


# ----------------------------- wrapper ---------------------------------------------
@jax.jit
def intermediate_pred(x, w1, b1, w2, b2, gamma, beta):
    """Forward pass of Intermediate_Pred. x: (B, C, N) -> (B, num_classes, N)."""
    B, C, N = x.shape
    K = w2.shape[0]
    tn = _choose_tile(N)
    nj = pl.cdiv(N, tn)
    grid = (B, nj)
    params = pltpu.CompilerParams(dimension_semantics=("parallel", "parallel"))

    b1c = b1.reshape(C, 1).astype(jnp.float32)
    b2c = b2.reshape(K, 1).astype(jnp.float32)

    x_spec = pl.BlockSpec((1, C, tn), lambda b, j: (b, 0, j))
    w1_spec = pl.BlockSpec((C, C), lambda b, j: (0, 0))
    vec_c_spec = pl.BlockSpec((C, 1), lambda b, j: (0, 0))
    w2_spec = pl.BlockSpec((K, C), lambda b, j: (0, 0))
    vec_k_spec = pl.BlockSpec((K, 1), lambda b, j: (0, 0))

    # ---- pass 1: per-tile BN statistics of h = conv1(x) ----
    stats = pl.pallas_call(
        functools.partial(_conv_bn_stats_kernel, n_valid=N, tn=tn),
        out_shape=jax.ShapeDtypeStruct((B, nj, C, 8), jnp.float32),
        grid=grid,
        in_specs=[x_spec, w1_spec, vec_c_spec],
        out_specs=pl.BlockSpec((1, 1, C, 8), lambda b, j: (b, j, 0, 0)),
        compiler_params=params,
    )(x, w1, b1c)

    # ---- tiny XLA finalize of the global (over B*N) BN statistics ----
    tot = jnp.sum(stats, axis=(0, 1))            # (C, 8); col 0 = sum, col 1 = sum sq
    count = float(B * N)
    mean = tot[:, 0] / count
    var = tot[:, 1] / count - mean * mean        # biased variance (training-mode BN)
    # TODO(synk): eval-mode BatchNorm1d would use running_mean/running_var here instead.
    scale = gamma * jax.lax.rsqrt(var + BN_EPS)
    shift = beta - mean * scale

    # ---- pass 2: conv1 (recomputed) + BN + ReLU + conv2 ----
    out = pl.pallas_call(
        _conv_bn_relu_conv_kernel,
        out_shape=jax.ShapeDtypeStruct((B, K, N), jnp.float32),
        grid=grid,
        in_specs=[x_spec, w1_spec, vec_c_spec, vec_c_spec, vec_c_spec,
                  w2_spec, vec_k_spec],
        out_specs=pl.BlockSpec((1, K, tn), lambda b, j: (b, 0, j)),
        compiler_params=params,
    )(x, w1, b1c, scale.reshape(C, 1), shift.reshape(C, 1), w2, b2c)
    return out


# ----------------------------- pure-JAX reference (PyTorch math) --------------------
def reference_forward(x, w1, b1, w2, b2, gamma, beta):
    h = jnp.einsum('oc,bcn->bon', w1, x) + b1[None, :, None]
    mean = jnp.mean(h, axis=(0, 2), keepdims=True)
    var = jnp.mean((h - mean) ** 2, axis=(0, 2), keepdims=True)
    hn = (h - mean) / jnp.sqrt(var + BN_EPS) * gamma[None, :, None] + beta[None, :, None]
    hr = jnp.maximum(hn, 0.0)
    return jnp.einsum('kc,bcn->bkn', w2, hr) + b2[None, :, None]


# ----------------------------- main -------------------------------------------------
if __name__ == "__main__":
    B, C, K, N = 2, 32, 8, 256            # batch, channels, num_classes, points

    key = jax.random.PRNGKey(0)
    kx, kw1, kb1, kw2, kb2, kg, kbeta = jax.random.split(key, 7)

    x = jax.random.normal(kx, (B, C, N), jnp.float32)

    # PyTorch Conv1d default init: U(-sqrt(1/(C_in*k)), sqrt(1/(C_in*k))), k=1
    bound = (1.0 / C) ** 0.5
    w1 = jax.random.uniform(kw1, (C, C), jnp.float32, -bound, bound)
    b1 = jax.random.uniform(kb1, (C,), jnp.float32, -bound, bound)
    w2 = jax.random.uniform(kw2, (K, C), jnp.float32, -bound, bound)
    b2 = jax.random.uniform(kb2, (K,), jnp.float32, -bound, bound)
    # BN affine params (PyTorch default is gamma=1, beta=0; perturb to exercise the math)
    gamma = jnp.ones((C,), jnp.float32) + 0.1 * jax.random.normal(kg, (C,), jnp.float32)
    beta = 0.1 * jax.random.normal(kbeta, (C,), jnp.float32)

    out = intermediate_pred(x, w1, b1, w2, b2, gamma, beta)
    out = jax.block_until_ready(out)

    ref = reference_forward(x, w1, b1, w2, b2, gamma, beta)
    assert out.shape == (B, K, N)
    assert jnp.allclose(out, ref, rtol=2e-3, atol=2e-3), "Pallas kernel mismatch vs reference"

    print("KERNEL_OK")
</pallas_src>

<mosaic_0001>
module attributes {stable_mosaic.version = 11 : i64} {
  func.func @_conv_bn_stats_kernel(%arg0: i32, %arg1: i32, %arg2: memref<1x32x256xf32, #tpu.memory_space<vmem>>, %arg3: memref<32x32xf32, #tpu.memory_space<vmem>>, %arg4: memref<32x1xf32, #tpu.memory_space<vmem>>, %arg5: memref<1x1x32x8xf32, #tpu.memory_space<vmem>>) attributes {dimension_semantics = [#tpu.dimension_semantics<parallel>, #tpu.dimension_semantics<parallel>], iteration_bounds = array<i64: 2, 1>, scalar_prefetch = 0 : i64, scratch_operands = 0 : i64, tpu.core_type = #tpu.core_type<tc>, window_params = [{transform_indices = @transform_0, window_bounds = array<i64: 1, 32, 256>}, {pipeline_mode = #tpu.pipeline_mode<synchronous>, transform_indices = @transform_1, window_bounds = array<i64: 32, 32>}, {pipeline_mode = #tpu.pipeline_mode<synchronous>, transform_indices = @transform_2, window_bounds = array<i64: 32, 1>}, {transform_indices = @transform_3, window_bounds = array<i64: 1, 1, 32, 8>}]} {
    %c0 = arith.constant 0 : index
    %c0_0 = arith.constant 0 : index
    %c0_1 = arith.constant 0 : index
    %0 = vector.load %arg2[%c0, %c0_0, %c0_1] : memref<1x32x256xf32, #tpu.memory_space<vmem>>, vector<1x32x256xf32>
    %1 = vector.shape_cast %0 : vector<1x32x256xf32> to vector<32x256xf32>
    %c0_2 = arith.constant 0 : index
    %c0_3 = arith.constant 0 : index
    %2 = vector.load %arg3[%c0_2, %c0_3] : memref<32x32xf32, #tpu.memory_space<vmem>>, vector<32x32xf32>
    %cst = arith.constant dense<0.000000e+00> : vector<32x256xf32>
    %3 = tpu.matmul %2, %1, %cst {dimension_numbers = #tpu.dot_dimension_numbers<[1], [0], [0], [1], [0, 0, 1, 1], [], []>} : vector<32x32xf32>, vector<32x256xf32>, vector<32x256xf32> -> vector<32x256xf32>
    %c0_4 = arith.constant 0 : index
    %c0_5 = arith.constant 0 : index
    %4 = vector.load %arg4[%c0_4, %c0_5] : memref<32x1xf32, #tpu.memory_space<vmem>>, vector<32x1xf32>
    %5 = vector.broadcast %4 : vector<32x1xf32> to vector<32x256xf32>
    %6 = arith.addf %3, %5 : vector<32x256xf32>
    %c256_i32 = arith.constant 256 : i32
    %7 = arith.muli %arg1, %c256_i32 : i32
    %8 = tpu.iota {dimensions = array<i32: 1>} : vector<32x256xi32>
    %9 = vector.broadcast %7 : i32 to vector<32x256xi32>
    %10 = arith.addi %9, %8 : vector<32x256xi32>
    %c256_i32_6 = arith.constant 256 : i32
    %11 = vector.broadcast %c256_i32_6 : i32 to vector<32x256xi32>
    %12 = arith.cmpi slt, %10, %11 : vector<32x256xi32>
    %cst_7 = arith.constant 0.000000e+00 : f32
    %13 = vector.broadcast %cst_7 : f32 to vector<32x256xf32>
    %14 = arith.select %12, %6, %13 : vector<32x256xi1>, vector<32x256xf32>
    %cst_8 = arith.constant dense<0.000000e+00> : vector<32xf32>
    %15 = vector.multi_reduction <add>, %14, %cst_8 [1] : vector<32x256xf32> to vector<32xf32>
    %16 = vector.shape_cast %15 : vector<32xf32> to vector<32x1xf32>
    %17 = arith.mulf %14, %14 : vector<32x256xf32>
    %cst_9 = arith.constant dense<0.000000e+00> : vector<32xf32>
    %18 = vector.multi_reduction <add>, %17, %cst_9 [1] : vector<32x256xf32> to vector<32xf32>
    %19 = vector.shape_cast %18 : vector<32xf32> to vector<32x1xf32>
    %20 = tpu.iota {dimensions = array<i32: 1>} : vector<32x8xi32>
    %c0_i32 = arith.constant 0 : i32
    %21 = vector.broadcast %c0_i32 : i32 to vector<32x8xi32>
    %22 = arith.cmpi eq, %20, %21 : vector<32x8xi32>
    %cst_10 = arith.constant 0.000000e+00 : f32
    %23 = vector.shape_cast %16 : vector<32x1xf32> to vector<32x1xf32>
    %24 = vector.broadcast %23 : vector<32x1xf32> to vector<32x8xf32>
    %25 = vector.broadcast %cst_10 : f32 to vector<32x8xf32>
    %26 = arith.select %22, %24, %25 : vector<32x8xi1>, vector<32x8xf32>
    %c1_i32 = arith.constant 1 : i32
    %27 = vector.broadcast %c1_i32 : i32 to vector<32x8xi32>
    %28 = arith.cmpi eq, %20, %27 : vector<32x8xi32>
    %cst_11 = arith.constant 0.000000e+00 : f32
    %29 = vector.shape_cast %19 : vector<32x1xf32> to vector<32x1xf32>
    %30 = vector.broadcast %29 : vector<32x1xf32> to vector<32x8xf32>
    %31 = vector.broadcast %cst_11 : f32 to vector<32x8xf32>
    %32 = arith.select %28, %30, %31 : vector<32x8xi1>, vector<32x8xf32>
    %33 = arith.addf %26, %32 : vector<32x8xf32>
    %c0_12 = arith.constant 0 : index
    %c0_13 = arith.constant 0 : index
    %c0_14 = arith.constant 0 : index
    %c0_15 = arith.constant 0 : index
    %34 = vector.load %arg5[%c0_12, %c0_13, %c0_14, %c0_15] : memref<1x1x32x8xf32, #tpu.memory_space<vmem>>, vector<1x1x32x8xf32>
    %35 = vector.shape_cast %34 : vector<1x1x32x8xf32> to vector<32x8xf32>
    %36 = vector.shape_cast %33 : vector<32x8xf32> to vector<1x1x32x8xf32>
    tpu.vector_store %arg5[%c0_12, %c0_13, %c0_14, %c0_15], %36 {strides = array<i32>} : memref<1x1x32x8xf32, #tpu.memory_space<vmem>>, vector<1x1x32x8xf32>,
    return
  }
  func.func @transform_0(%arg0: i32, %arg1: i32) -> (i32, i32, i32) {
    %c0_i32 = arith.constant 0 : i32
    %c0_i32_0 = arith.constant 0 : i32
    return %arg0, %c0_i32, %arg1 : i32, i32, i32
  }
  func.func @transform_1(%arg0: i32, %arg1: i32) -> (i32, i32) {
    %c0_i32 = arith.constant 0 : i32
    %c0_i32_0 = arith.constant 0 : i32
    %c0_i32_1 = arith.constant 0 : i32
    return %c0_i32, %c0_i32_0 : i32, i32
  }
  func.func @transform_2(%arg0: i32, %arg1: i32) -> (i32, i32) {
    %c0_i32 = arith.constant 0 : i32
    %c0_i32_0 = arith.constant 0 : i32
    %c0_i32_1 = arith.constant 0 : i32
    return %c0_i32, %c0_i32_0 : i32, i32
  }
  func.func @transform_3(%arg0: i32, %arg1: i32) -> (i32, i32, i32, i32) {
    %c0_i32 = arith.constant 0 : i32
    %c0_i32_0 = arith.constant 0 : i32
    %c0_i32_1 = arith.constant 0 : i32
    return %arg0, %arg1, %c0_i32, %c0_i32_0 : i32, i32, i32, i32
  }
}

module attributes {stable_mosaic.version = 11 : i64} {
  func.func @_conv_bn_relu_conv_kernel(%arg0: i32, %arg1: i32, %arg2: memref<1x32x256xf32, #tpu.memory_space<vmem>>, %arg3: memref<32x32xf32, #tpu.memory_space<vmem>>, %arg4: memref<32x1xf32, #tpu.memory_space<vmem>>, %arg5: memref<32x1xf32, #tpu.memory_space<vmem>>, %arg6: memref<32x1xf32, #tpu.memory_space<vmem>>, %arg7: memref<8x32xf32, #tpu.memory_space<vmem>>, %arg8: memref<8x1xf32, #tpu.memory_space<vmem>>, %arg9: memref<1x8x256xf32, #tpu.memory_space<vmem>>) attributes {dimension_semantics = [#tpu.dimension_semantics<parallel>, #tpu.dimension_semantics<parallel>], iteration_bounds = array<i64: 2, 1>, scalar_prefetch = 0 : i64, scratch_operands = 0 : i64, tpu.core_type = #tpu.core_type<tc>, window_params = [{transform_indices = @transform_0, window_bounds = array<i64: 1, 32, 256>}, {pipeline_mode = #tpu.pipeline_mode<synchronous>, transform_indices = @transform_1, window_bounds = array<i64: 32, 32>}, {pipeline_mode = #tpu.pipeline_mode<synchronous>, transform_indices = @transform_2, window_bounds = array<i64: 32, 1>}, {pipeline_mode = #tpu.pipeline_mode<synchronous>, transform_indices = @transform_3, window_bounds = array<i64: 32, 1>}, {pipeline_mode = #tpu.pipeline_mode<synchronous>, transform_indices = @transform_4, window_bounds = array<i64: 32, 1>}, {pipeline_mode = #tpu.pipeline_mode<synchronous>, transform_indices = @transform_5, window_bounds = array<i64: 8, 32>}, {pipeline_mode = #tpu.pipeline_mode<synchronous>, transform_indices = @transform_6, window_bounds = array<i64: 8, 1>}, {transform_indices = @transform_7, window_bounds = array<i64: 1, 8, 256>}]} {
    %c0 = arith.constant 0 : index
    %c0_0 = arith.constant 0 : index
    %c0_1 = arith.constant 0 : index
    %0 = vector.load %arg2[%c0, %c0_0, %c0_1] : memref<1x32x256xf32, #tpu.memory_space<vmem>>, vector<1x32x256xf32>
    %1 = vector.shape_cast %0 : vector<1x32x256xf32> to vector<32x256xf32>
    %c0_2 = arith.constant 0 : index
    %c0_3 = arith.constant 0 : index
    %2 = vector.load %arg3[%c0_2, %c0_3] : memref<32x32xf32, #tpu.memory_space<vmem>>, vector<32x32xf32>
    %cst = arith.constant dense<0.000000e+00> : vector<32x256xf32>
    %3 = tpu.matmul %2, %1, %cst {dimension_numbers = #tpu.dot_dimension_numbers<[1], [0], [0], [1], [0, 0, 1, 1], [], []>} : vector<32x32xf32>, vector<32x256xf32>, vector<32x256xf32> -> vector<32x256xf32>
    %c0_4 = arith.constant 0 : index
    %c0_5 = arith.constant 0 : index
    %4 = vector.load %arg4[%c0_4, %c0_5] : memref<32x1xf32, #tpu.memory_space<vmem>>, vector<32x1xf32>
    %5 = vector.broadcast %4 : vector<32x1xf32> to vector<32x256xf32>
    %6 = arith.addf %3, %5 : vector<32x256xf32>
    %c0_6 = arith.constant 0 : index
    %c0_7 = arith.constant 0 : index
    %7 = vector.load %arg5[%c0_6, %c0_7] : memref<32x1xf32, #tpu.memory_space<vmem>>, vector<32x1xf32>
    %8 = vector.broadcast %7 : vector<32x1xf32> to vector<32x256xf32>
    %9 = arith.mulf %6, %8 : vector<32x256xf32>
    %c0_8 = arith.constant 0 : index
    %c0_9 = arith.constant 0 : index
    %10 = vector.load %arg6[%c0_8, %c0_9] : memref<32x1xf32, #tpu.memory_space<vmem>>, vector<32x1xf32>
    %11 = vector.broadcast %10 : vector<32x1xf32> to vector<32x256xf32>
    %12 = arith.addf %9, %11 : vector<32x256xf32>
    %cst_10 = arith.constant 0.000000e+00 : f32
    %13 = vector.broadcast %cst_10 : f32 to vector<32x256xf32>
    %14 = arith.maximumf %12, %13 : vector<32x256xf32>
    %c0_11 = arith.constant 0 : index
    %c0_12 = arith.constant 0 : index
    %15 = vector.load %arg7[%c0_11, %c0_12] : memref<8x32xf32, #tpu.memory_space<vmem>>, vector<8x32xf32>
    %cst_13 = arith.constant dense<0.000000e+00> : vector<8x256xf32>
    %16 = tpu.matmul %15, %14, %cst_13 {dimension_numbers = #tpu.dot_dimension_numbers<[1], [0], [0], [1], [0, 0, 1, 1], [], []>} : vector<8x32xf32>, vector<32x256xf32>, vector<8x256xf32> -> vector<8x256xf32>
    %c0_14 = arith.constant 0 : index
    %c0_15 = arith.constant 0 : index
    %17 = vector.load %arg8[%c0_14, %c0_15] : memref<8x1xf32, #tpu.memory_space<vmem>>, vector<8x1xf32>
    %18 = vector.broadcast %17 : vector<8x1xf32> to vector<8x256xf32>
    %19 = arith.addf %16, %18 : vector<8x256xf32>
    %c0_16 = arith.constant 0 : index
    %c0_17 = arith.constant 0 : index
    %c0_18 = arith.constant 0 : index
    %20 = vector.load %arg9[%c0_16, %c0_17, %c0_18] : memref<1x8x256xf32, #tpu.memory_space<vmem>>, vector<1x8x256xf32>
    %21 = vector.shape_cast %20 : vector<1x8x256xf32> to vector<8x256xf32>
    %22 = vector.shape_cast %19 : vector<8x256xf32> to vector<1x8x256xf32>
    tpu.vector_store %arg9[%c0_16, %c0_17, %c0_18], %22 {strides = array<i32>} : memref<1x8x256xf32, #tpu.memory_space<vmem>>, vector<1x8x256xf32>,
    return
  }
  func.func @transform_0(%arg0: i32, %arg1: i32) -> (i32, i32, i32) {
    %c0_i32 = arith.constant 0 : i32
    %c0_i32_0 = arith.constant 0 : i32
    return %arg0, %c0_i32, %arg1 : i32, i32, i32
  }
  func.func @transform_1(%arg0: i32, %arg1: i32) -> (i32, i32) {
    %c0_i32 = arith.constant 0 : i32
    %c0_i32_0 = arith.constant 0 : i32
    %c0_i32_1 = arith.constant 0 : i32
    return %c0_i32, %c0_i32_0 : i32, i32
  }
  func.func @transform_2(%arg0: i32, %arg1: i32) -> (i32, i32) {
    %c0_i32 = arith.constant 0 : i32
    %c0_i32_0 = arith.constant 0 : i32
    %c0_i32_1 = arith.constant 0 : i32
    return %c0_i32, %c0_i32_0 : i32, i32
  }
  func.func @transform_3(%arg0: i32, %arg1: i32) -> (i32, i32) {
    %c0_i32 = arith.constant 0 : i32
    %c0_i32_0 = arith.constant 0 : i32
    %c0_i32_1 = arith.constant 0 : i32
    return %c0_i32, %c0_i32_0 : i32, i32
  }
  func.func @transform_4(%arg0: i32, %arg1: i32) -> (i32, i32) {
    %c0_i32 = arith.constant 0 : i32
    %c0_i32_0 = arith.constant 0 : i32
    %c0_i32_1 = arith.constant 0 : i32
    return %c0_i32, %c0_i32_0 : i32, i32
  }
  func.func @transform_5(%arg0: i32, %arg1: i32) -> (i32, i32) {
    %c0_i32 = arith.constant 0 : i32
    %c0_i32_0 = arith.constant 0 : i32
    %c0_i32_1 = arith.constant 0 : i32
    return %c0_i32, %c0_i32_0 : i32, i32
  }
  func.func @transform_6(%arg0: i32, %arg1: i32) -> (i32, i32) {
    %c0_i32 = arith.constant 0 : i32
    %c0_i32_0 = arith.constant 0 : i32
    %c0_i32_1 = arith.constant 0 : i32
    return %c0_i32, %c0_i32_0 : i32, i32
  }
  func.func @transform_7(%arg0: i32, %arg1: i32) -> (i32, i32, i32) {
    %c0_i32 = arith.constant 0 : i32
    %c0_i32_0 = arith.constant 0 : i32
    return %arg0, %c0_i32, %arg1 : i32, i32, i32
  }
}

</mosaic_0001>

<bundles_post_ra>
// kernel: intermediate_pred.3
= control target key start
LH: loop header
LB: loop body
LE: loop exit
PB: predicated region body
PF: predicated region fallthrough
CT: control target
= control target key end

     0   :  { %12 = vsyncpa [#allocation3], 0  ;;  %s1083_s0 = inlined_call_operand.vmem [shape: f32[2,32,256], index: 0, kind: input, shape index: {}]   ;;  %s1084_s1 = inlined_call_operand.vmem [shape: f32[32,32], index: 1, kind: input, shape index: {}]   ;;  %s1085_s2 = inlined_call_operand.vmem [shape: f32[32,1], index: 2, kind: input, shape index: {}]   ;;  %s1086_s3 = inlined_call_operand.vmem [shape: f32[32,1], index: 3, kind: input, shape index: {}]   ;;  %s1087_s4 = inlined_call_operand.vmem [shape: f32[32,1], index: 4, kind: input, shape index: {}]   ;;  %s1088_s5 = inlined_call_operand.vmem [shape: f32[8,32], index: 5, kind: input, shape index: {}]   ;;  %s1089_s6 = inlined_call_operand.vmem [shape: f32[8,1], index: 6, kind: input, shape index: {}]   ;;  %s1090_s7 = inlined_call_operand.hbm [shape: f32[2,8,256], index: 7, kind: output, shape index: {}]  }
   0x1   :  { %14 = vsyncpa [#allocation3 + $0x1], 0  ;;  %s912_s24 = smov 0   ;;  %s914_s25 = smov 0  }
   0x2   :  { %s916_s26 = smov 0   ;;  %s918_s27 = smov 0  }
   0x3   :  { %s920_s28 = smov 0   ;;  %s922_s29 = smov 0  }
   0x4 LB: > { %s694_s30 = sadd.s32 4294967295, %s867_s29   ;;  %s695_s8 = sadd.s32 4294967294, %s867_s29   ;;  %s867_s29 = sphi %s922_s29, %s20_s29   ;;  %s863_s28 = sphi %s920_s28, %s1097_s28   ;;  %s859_s27 = sphi %s918_s27, %s1096_s27   ;;  %s855_s26 = sphi %s916_s26, %s1095_s26   ;;  %s851_s25 = sphi %s914_s25, %s1094_s25   ;;  %s847_s24 = sphi %s912_s24, %s1093_s24  }
   0x5   : > { %s32_s9 = sadd.s32 1, %s863_s28  ;;  %s195_s10 = sadd.s32 1, %s855_s26 }
   0x6   : > { %p34_p0 = scmp.ge.s32.totalorder %s32_s9, 2  ;;  %p205_p1 = scmp.ne.s32.totalorder %s855_s26, %s851_s25 }
   0x7   : > { %p206_p2 = scmp.eq.s32.totalorder %s694_s30, 1  ;;  %p211_p3 = scmp.ne.s32.totalorder %s851_s25, %s847_s24 }
   0x8   : > { %s1099_s9 = smov (%p34_p0, %s32_s9), 0  ;;  %p212_p5 = scmp.eq.s32.totalorder %s695_s8, 1 }
   0x9   : > { %p952_p4 = por %p206_p2, %p205_p1  ;;  %s190_s12 = ssub.s32 %s863_s28, %s1099_s9 }
   0xa   : > { %p698_p6 = scmp.ge.s32.totalorder %s867_s29, 1  ;;  %p193_p7 = scmp.eq.s32.totalorder %s190_s12, 0 }
   0xb   : > { %p959_p8 = por %p212_p5, %p211_p3  ;;  %p261_p9 = scmp.lt.s32.totalorder %s867_s29, 3 }
   0xc   : > { %s965_s14 = scalar_select %p193_p7, %s855_s26, %s195_s10  }
   0xd   : > { %p262_p10 = pnand %p698_p6, %p261_p9 }
   0xe   : > { %p298_p11 = scmp.lt.s32.totalorder (!%p262_p10), %s859_s27, 1  ;;  %v869_v0 = vmov (!%p262_p10), 0.0   ;;  %v320_v1 = vld [vmem:[%s1085_s2] sm:$0xff] (!%p262_p10)  ;;  %v870_v3 = vmov (!%p262_p10), 0   ;;  %v321_v4 = vld [vmem:[%s1085_s2 + $0x8] sm:$0xff] (!%p262_p10)  ;;  %v322_v17 = vld [vmem:[%s1085_s2 + $0x10] sm:$0xff] (!%p262_p10) }
   0xf   : > { %265 = sbr.rel (%p262_p10) target bundleno = 505 (0x1f9), region = 48  ;;  %421 = vmatprep.mubr.f32.mxu0 (!%p262_p10), %v869_v0  ;;  %v446_v2 = vld [vmem:[%s1086_s3] sm:$0xff] (!%p262_p10)  ;;  %592 = vmatprep.mubr.f32.mxu1 (!%p262_p10), %v869_v0  ;;  %v447_v5 = vld [vmem:[%s1086_s3 + $0x8] sm:$0xff] (!%p262_p10)  ;;  %v323_v18 = vld [vmem:[%s1085_s2 + $0x18] sm:$0xff] (!%p262_p10)  ;;  %vm344_vm0 = vcmask (!%p262_p10), 261120   ;;  %s294_s17 = sand.u32 (!%p262_p10), 1, %s851_s25  }
  0x10   : > { %787 = vset.pattern.permute.xlu0 (!%p262_p10), %v870_v3  ;;  %788 = vset.pattern.permute.xlu1 (!%p262_p10), %v870_v3  ;;  %v478_v20 = vld [vmem:[%s1087_s4] sm:$0xff] (!%p262_p10)  ;;  %v479_v21 = vld [vmem:[%s1087_s4 + $0x8] sm:$0xff] (!%p262_p10)  ;;  %v448_v23 = vld [vmem:[%s1086_s3 + $0x10] sm:$0xff] (!%p262_p10)  ;;  %s699_s18 = sshll.u32 (!%p262_p10), %s294_s17, 4  ;;  %s871_s10 = smov (!%p262_p10), [#allocation2]  }
  0x11   : > { %326 = vperm.xlu0 (!%p262_p10), %787, %v320_v1   ;;  %452 = vperm.xlu1 (!%p262_p10), %788, %v446_v2   ;;  %v316_v22 = vld [vmem:[%s1084_s1] sm:$0xff] (!%p262_p10)  ;;  %v449_v24 = vld [vmem:[%s1086_s3 + $0x18] sm:$0xff] (!%p262_p10)  ;;  %v317_v25 = vld [vmem:[%s1084_s1 + $0x8] sm:$0xff] (!%p262_p10) }
  0x12   : > { %v480_v26 = vld [vmem:[%s1087_s4 + $0x10] sm:$0xff] (!%p262_p10)  ;;  %v481_v27 = vld [vmem:[%s1087_s4 + $0x18] sm:$0xff] (!%p262_p10)  ;;  %v519_v29 = vld [vmem:[%s1089_s6] sm:$0xff] (!%p262_p10) }
  0x13   : > { %v318_v28 = vld [vmem:[%s1084_s1 + $0x10] sm:$0xff] (!%p262_p10)  ;;  %v319_v30 = vld [vmem:[%s1084_s1 + $0x18] sm:$0xff] (!%p262_p10) }
  0x15   : > { %331 = vperm.xlu0 (!%p262_p10), %787, %v321_v4   ;;  %457 = vperm.xlu1 (!%p262_p10), %788, %v447_v5  }
  0x16   : > { %s299_s19 = scalar_select %p298_p11, %s859_s27, 1 }
  0x18   : > { %s712_s20 = sshll.u32 %s299_s19, 6  ;;  %s713_s19 = sshll.u32 %s859_s27, 8 }
  0x19   : > { %s305_s12 = scalar_lea.vmem %s1083_s0, %s712_s20  ;;  %336 = vperm.xlu0 %787, %v322_v17   ;;  %341 = vperm.xlu1 %788, %v323_v18   ;;  %s296_s20 = scalar_lea.vmem [#allocation2], %s699_s18 }
  0x1a   : > { %v309_v6 = vld [vmem:[%s305_s12 + $0x8] sm:$0xff]  ;;  %v311_v7 = vld [vmem:[%s305_s12 + $0x18] sm:$0xff]  ;;  %v308_v8 = vld [vmem:[%s305_s12] sm:$0xff]  ;;  %s618_s21 = sshll.u32 %s296_s20, 4  ;;  %s1036_s30 = scalar_lea.hbm %s1090_s7, %s713_s19  ;;  %s1038_s21 = int_to_ptr.vmem [resolvable:$true] %s618_s21 }
  0x1b   : > { %v714_v9 = vpack.c.bf16 %v311_v7, %v309_v6  ;;  %v310_v10 = vld [vmem:[%s305_s12 + $0x10] sm:$0xff]  ;;  %v313_v11 = vld [vmem:[%s305_s12 + $0x28] sm:$0xff]  ;;  %v315_v12 = vld [vmem:[%s305_s12 + $0x38] sm:$0xff]  ;;  %s602_s27 = scalar_lea.sflag [#allocation3], %s294_s17  ;;  %s789_s8 = scalar_lea.vmem %s1038_s21, 256 }
  0x1c   : > { %v716_v13 = vpack.c.bf16 %v310_v10, %v308_v8  ;;  %v718_v14 = vpack.c.bf16 %v315_v12, %v313_v11  ;;  %v312_v15 = vld [vmem:[%s305_s12 + $0x20] sm:$0xff]  ;;  %v314_v16 = vld [vmem:[%s305_s12 + $0x30] sm:$0xff]  ;;  %p790_p12 = scmp.ne.s32.totalorder %s1038_s21, %s789_s8  ;;  %s793_s12 = sshll.u32 %s871_s10, 4  ;;  %s794_s12 = int_to_ptr.vmem [resolvable:$false] %s793_s12 }
  0x1d   : > { %715 = vmatprep.subr.bf16.mxu0 %v714_v9  ;;  %v720_v19 = vpack.c.bf16 %v314_v16, %v312_v15  ;;  %484 = vperm.xlu0 %787, %v478_v20   ;;  %s795_s15 = scalar_lea.vmem %s794_s12, 512  ;;  %p796_p1 = scmp.lt.s32.totalorder %s1038_s21, %s794_s12 }
  0x1e   : > { %717 = vmatpush1.bf16.msra.mxu0 %v716_v13  ;;  %489 = vperm.xlu1 %788, %v479_v21   ;;  %p791_p13 = pnand %p790_p12, %p952_p4  ;;  %p797_p2 = scmp.lt.s32.totalorder %s795_s15, %s789_s8 }
  0x1f   : > { %719 = vmatprep.subr.bf16.mxu0 %v718_v14 }
  0x20   : > { %p792_p0 = pneg %p791_p13  ;;  %p798_p3 = por %p797_p2, %p796_p1 }
  0x21   : > { %462 = vperm.xlu0 %787, %v448_v23   ;;  %v518_v23 = vld [vmem:[%s1088_s5] sm:$0xff] }
  0x22   : > { %721 = vmatpush1.bf16.msra.mxu0 %v720_v19  ;;  %467 = vperm.xlu1 %788, %v449_v24   ;;  %p799_p5 = pnand %p798_p3, %p792_p0 }
  0x25   : > { %702 = vmatmul.mubr.msk.f32.vlgmr.msra.gmra.mrb[0].mxu0 %vm344_vm0, %v316_v22  ;;  %494 = vperm.xlu0 %787, %v480_v26  }
  0x26   : > { %427 = vmatprep.mubr.f32.mxu0 %v869_v0  ;;  %499 = vperm.xlu1 %788, %v481_v27  }
  0x29   : > { %703 = vmatmul.mubr.msk.f32.gmra.mrb[2].mxu0 %vm344_vm0, %v317_v25  ;;  %522 = vperm.xlu0 %787, %v519_v29  }
  0x2a   : > { %433 = vmatprep.mubr.f32.mxu0 %v869_v0 }
  0x2d   : > { %704 = vmatmul.mubr.msk.f32.gmra.mrb[4].mxu0 %vm344_vm0, %v318_v28 }
  0x2e   : > { %439 = vmatprep.mubr.f32.mxu0 %v869_v0 }
  0x31   : > { %705 = vmatmul.mubr.msk.f32.gmra.mrb[6].mxu0 %vm344_vm0, %v319_v30 }
  0x90   : > { %v327_v31 = vpop.permute.xlu0 %326  ;;  %v453_v32 = vpop.permute.xlu1 %452 }
  0x94   : > { %v332_v33 = vpop.permute.xlu0 %331  ;;  %v458_v34 = vpop.permute.xlu1 %457 }
  0x98   : > { %v337_v35 = vpop.permute.xlu0 %336  ;;  %v342_v36 = vpop.permute.xlu1 %341 }
  0x9c   : > { %v485_v40 = vpop.permute.xlu0 %484 }
  0x9d   : > { %v490_v43 = vpop.permute.xlu1 %489 }
  0xa0   : > { %v463_v51 = vpop.permute.xlu0 %462 }
  0xa1   : > { %v468_v58 = vpop.permute.xlu1 %467 }
  0xa4   : > { %v495_v7 = vpop.permute.xlu0 %494 }
  0xa5   : > { %v500_v12 = vpop.permute.xlu1 %499 }
  0xa8   : > { %v523_v24 = vpop.permute.xlu0 %522 }
  0xf8   : > { %v423_v37 = vpop.f32.mrb[0].mxu0 }
  0xf9   : > { %v424_v38 = vadd.f32 %v423_v37, %v327_v31  ;;  %v425_v39 = vpop.f32.mrb[1].mxu0 }
  0xfa   : > { %v426_v41 = vadd.f32 %v425_v39, %v327_v31 }
  0xfb   : > { %v470_v42 = vmul.f32 %v453_v32, %v424_v38 }
  0xfc   : > { %v471_v44 = vmul.f32 %v453_v32, %v426_v41  ;;  %v429_v45 = vpop.f32.mrb[2].mxu0 }
  0xfd   : > { %v430_v46 = vadd.f32 %v429_v45, %v332_v33  ;;  %v431_v47 = vpop.f32.mrb[3].mxu0  ;;  %v502_v50 = vadd.f32 %v485_v40, %v470_v42 }
  0xfe   : > { %v432_v48 = vadd.f32 %v431_v47, %v332_v33  ;;  %v503_v54 = vadd.f32 %v485_v40, %v471_v44 }
  0xff   : > { %v472_v49 = vmul.f32 %v458_v34, %v430_v46  ;;  %v510_v62 = vmax.f32 %v502_v50, 0.0 }
 0x100   : > { %v473_v52 = vmul.f32 %v458_v34, %v432_v48  ;;  %v435_v53 = vpop.f32.mrb[4].mxu0  ;;  %v511_v2 = vmax.f32 %v503_v54, 0.0 }
 0x101   : > { %v436_v55 = vadd.f32 %v435_v53, %v337_v35  ;;  %v437_v56 = vpop.f32.mrb[5].mxu0  ;;  %v504_v57 = vadd.f32 %v490_v43, %v472_v49 }
 0x102   : > { %v438_v59 = vadd.f32 %v437_v56, %v337_v35  ;;  %v505_v60 = vadd.f32 %v490_v43, %v473_v52 }
 0x103   : > { %v474_v61 = vmul.f32 %v463_v51, %v436_v55  ;;  %v512_v63 = vmax.f32 %v504_v57, 0.0 }
 0x104   : > { %v475_v0 = vmul.f32 %v463_v51, %v438_v59  ;;  %v441_v1 = vpop.f32.mrb[6].mxu0  ;;  %v513_v3 = vmax.f32 %v505_v60, 0.0 }
 0x105   : > { %v442_v4 = vadd.f32 %v441_v1, %v342_v36  ;;  %v443_v5 = vpop.f32.mrb[7].mxu0  ;;  %v724_v6 = vpack.c.bf16 %v512_v63, %v510_v62  ;;  %v506_v10 = vadd.f32 %v495_v7, %v474_v61 }
 0x106   : > { %v444_v8 = vadd.f32 %v443_v5, %v342_v36  ;;  %v722_v9 = vpack.c.bf16 %v513_v3, %v511_v2  ;;  %v507_v13 = vadd.f32 %v495_v7, %v475_v0 }
 0x107   : > { %v476_v11 = vmul.f32 %v468_v58, %v442_v4  ;;  %v514_v17 = vmax.f32 %v506_v10, 0.0 }
 0x108   : > { %v477_v14 = vmul.f32 %v468_v58, %v444_v8  ;;  %723 = vmatprep.subr.bf16.mxu1 %v722_v9  ;;  %v515_v19 = vmax.f32 %v507_v13, 0.0 }
 0x109   : > { %v508_v15 = vadd.f32 %v500_v12, %v476_v11  ;;  %725 = vmatpush1.bf16.msra.mxu1 %v724_v6 }
 0x10a   : > { %v509_v16 = vadd.f32 %v500_v12, %v477_v14 }
 0x10b   : > { %v516_v18 = vmax.f32 %v508_v15, 0.0 }
 0x10c   : > { %v517_v20 = vmax.f32 %v509_v16, 0.0 }
 0x10d   : > { %v728_v21 = vpack.c.bf16 %v516_v18, %v514_v17 }
 0x10e   : > { %v726_v22 = vpack.c.bf16 %v517_v20, %v515_v19 }
 0x110   : > { %727 = vmatprep.subr.bf16.mxu1 %v726_v22 }
 0x111   : > { %729 = vmatpush1.bf16.msra.mxu1 %v728_v21 }
 0x114   : > { %706 = vmatmul.mubr.msk.f32.vlgmr.msra.gmra.mrb[0].mxu1 %vm344_vm0, %v518_v23 }
 0x1e7   : > { %v594_v25 = vpop.f32.mrb[0].mxu1 }
 0x1e8   : > { %v595_v26 = vadd.f32 %v594_v25, %v523_v24  ;;  %v596_v27 = vpop.f32.mrb[1].mxu1 }
 0x1e9   : > { %v597_v28 = vadd.f32 %v596_v27, %v523_v24 }
 0x1ea   : > { %599 = vst [vmem:[%s296_s20] sm:$0xff] %v595_v26 }
 0x1eb   : > { %600 = vst [vmem:[%s296_s20 + $0x8] sm:$0xff] %v597_v28 }
 0x1ec   : > { %802 = shalt.err (!%p799_p5)
}
 0x1ed   : > { %s803_s16 = scalar_lea.hbm %s1036_s30, 256  ;;  %s807_s19 = scalar_lea.hbm %s1090_s7, 512 }
 0x1ee   : > { %p804_p6 = scmp.ne.s32.totalorder %s1036_s30, %s803_s16  ;;  %p808_p10 = scmp.lt.u32.totalorder %s1036_s30, %s1090_s7 }
 0x1ef   : > { %p809_p11 = scmp.lt.u32.totalorder %s807_s19, %s803_s16  ;;  %p811_p13 = scmp.lt.u32.totalorder %s803_s16, %s1036_s30 }
 0x1f0   : > { %p805_p7 = pnand %p804_p6, %p952_p4 }
 0x1f1   : > { %p810_p12 = por %p809_p11, %p808_p10 }
 0x1f2   : > { %p806_p9 = pneg %p805_p7 }
 0x1f3   : > { %p812_p0 = por %p811_p13, %p810_p12 }
 0x1f5   : > { %p813_p1 = pnand %p812_p0, %p806_p9 }
 0x1f7   : > { %816 = shalt.err (!%p813_p1)
}
 0x1f8   : > { %730 = dma.vmem_to_hbm [thread:$0]  (%p952_p4), %s1038_s21, 256, %s1036_s30, %s602_s27  }
 0x1f9 PF: > { %p736_p2 = scmp.ge.s32.totalorder %s867_s29, 2  ;;  %s630_s23 = sand.u32 1, %s847_s24  }
 0x1fa   : > { %s631_s8 = scalar_lea.sflag [#allocation3], %s630_s23 }
 0x1fb   : > { %p733_p3 = pnand %p736_p2, %p959_p8 }
 0x1fd   : > { %842 = dma.done.wait (!%p733_p3), %s631_s8, 256  }
 0x1fe   : > { %844 = vsyncadd (!%p733_p3), %s631_s8, 4294967040  ;;  %s20_s29 = sadd.s32 1, %s867_s29   ;;  %s1093_s24 = smov %s851_s25 }
 0x1ff   : > { %p17_p5 = scmp.ge.s32.totalorder %s20_s29, 4   ;;  %s1094_s25 = smov %s855_s26 }
 0x200   : > { %s1095_s26 = smov %s965_s14  ;;  %s1096_s27 = smov %s863_s28 }
 0x201   : > { %s1097_s28 = smov %s1099_s9  ;;  %19 = sbr.rel (!%p17_p5) target bundleno = 4 (0x4), region = 83 }
 0x208   :  { %636 = vsyncpa [#allocation3], 1 }
 0x209   :  { %638 = vsyncpa [#allocation3 + $0x1], 1 }

// kernel: intermediate_pred.2
= control target key start
LH: loop header
LB: loop body
LE: loop exit
PB: predicated region body
PF: predicated region fallthrough
CT: control target
= control target key end

     0   :  { %8 = vsyncpa [#allocation3], 0  ;;  %s881_s0 = inlined_call_operand.hbm [shape: f32[2,32,256], index: 0, kind: input, shape index: {}]   ;;  %s882_s1 = inlined_call_operand.vmem [shape: f32[32,32], index: 1, kind: input, shape index: {}]   ;;  %s883_s2 = inlined_call_operand.vmem [shape: f32[32,1], index: 2, kind: input, shape index: {}]   ;;  %s884_s3 = inlined_call_operand.vmem [shape: f32[2,1,32,8], index: 3, kind: output, shape index: {}]  }
   0x1   :  { %10 = vsyncpa [#allocation3 + $0x1], 0  ;;  %s721_s12 = smov 0   ;;  %s723_s13 = smov 0  }
   0x2   :  { %s725_s14 = smov 0   ;;  %s727_s15 = smov 0  }
   0x3   :  { %s729_s16 = smov 0   ;;  %s731_s17 = smov 0  }
   0x4 LB: > { %s522_s18 = sadd.s32 4294967295, %s694_s17   ;;  %s28_s19 = sadd.s32 1, %s690_s16  ;;  %s694_s17 = sphi %s731_s17, %s16_s17   ;;  %s690_s16 = sphi %s729_s16, %s892_s16   ;;  %s686_s15 = sphi %s727_s15, %s891_s15   ;;  %s682_s14 = sphi %s725_s14, %s890_s14   ;;  %s678_s13 = sphi %s723_s13, %s889_s13   ;;  %s674_s12 = sphi %s721_s12, %s888_s12  }
   0x5   : > { %p30_p0 = scmp.ge.s32.totalorder %s28_s19, 2  ;;  %s37_s20 = sadd.s32 1, %s682_s14 }
   0x6   : > { %p44_p1 = scmp.ne.s32.totalorder %s682_s14, %s678_s13  ;;  %p45_p2 = scmp.eq.s32.totalorder %s694_s17, 0 }
   0x7   : > { %s894_s19 = smov (%p30_p0, %s28_s19), 0  ;;  %p50_p4 = scmp.ne.s32.totalorder %s678_s13, %s674_s12 }
   0x8   : > { %p757_p3 = por %p45_p2, %p44_p1  ;;  %s32_s22 = ssub.s32 %s690_s16, %s894_s19 }
   0x9   : > { %p51_p5 = scmp.eq.s32.totalorder %s522_s18, 0  ;;  %p35_p6 = scmp.eq.s32.totalorder %s32_s22, 0 }
   0xa   : > { %p559_p8 = scmp.lt.s32.totalorder %s694_s17, 2  ;;  %s150_s25 = sand.u32 1, %s682_s14  }
   0xb   : > { %p764_p7 = por %p51_p5, %p50_p4  ;;  %s539_s26 = sshll.u32 %s690_s16, 10 }
   0xc   : > { %s770_s24 = scalar_select %p35_p6, %s682_s14, %s37_s20  }
   0xd   : > { %s526_s27 = sshll.u32 %s150_s25, 6  ;;  %s777_s30 = scalar_lea.hbm %s881_s0, %s539_s26 }
   0xe   : > { %s154_s4 = scalar_lea.vmem [#allocation2], %s526_s27  ;;  %p781_p9 = pnand %p559_p8, %p757_p3 }
   0xf   : > { %s163_s5 = sshll.u32 %s154_s4, 4  ;;  %s787_s7 = scalar_lea.sflag [#allocation3], %s150_s25  ;;  %s785_s5 = int_to_ptr.vmem [resolvable:$true] %s163_s5 }
  0x10   : > { %s614_s8 = scalar_lea.hbm %s777_s30, 1024  ;;  %p616_p11 = pneg %p781_p9 }
  0x11   : > { %p615_p10 = scmp.ne.s32.totalorder %s777_s30, %s614_s8  ;;  %s619_s11 = scalar_lea.hbm %s881_s0, 2048 }
  0x12   : > { %p620_p0 = scmp.lt.u32.totalorder %s777_s30, %s881_s0  ;;  %p621_p1 = scmp.lt.u32.totalorder %s619_s11, %s614_s8 }
  0x13   : > { %p617_p12 = pnand %p616_p11, %p615_p10  ;;  %p623_p3 = scmp.lt.u32.totalorder %s614_s8, %s777_s30 }
  0x14   : > { %p622_p2 = por %p621_p1, %p620_p0 }
  0x15   : > { %p618_p13 = pneg %p617_p12 }
  0x16   : > { %p624_p4 = por %p623_p3, %p622_p2 }
  0x18   : > { %p625_p5 = pnand %p624_p4, %p618_p13 }
  0x1a   : > { %628 = shalt.err (!%p625_p5)
}
  0x1b   : > { %s629_s20 = scalar_lea.vmem %s785_s5, 1024  ;;  %s696_s21 = smov [#allocation2]  }
  0x1c   : > { %p630_p6 = scmp.ne.s32.totalorder %s785_s5, %s629_s20  ;;  %s634_s22 = sshll.u32 %s696_s21, 4  ;;  %s635_s22 = int_to_ptr.vmem [resolvable:$false] %s634_s22 }
  0x1d   : > { %s636_s25 = scalar_lea.vmem %s635_s22, 2048  ;;  %p637_p12 = scmp.lt.s32.totalorder %s785_s5, %s635_s22 }
  0x1e   : > { %p632_p8 = pnand %p630_p6, %p616_p11  ;;  %p638_p0 = scmp.lt.s32.totalorder %s636_s25, %s629_s20 }
  0x20   : > { %p633_p10 = pneg %p632_p8  ;;  %p639_p1 = por %p638_p0, %p637_p12 }
  0x22   : > { %p640_p2 = pnand %p639_p1, %p633_p10 }
  0x24   : > { %643 = shalt.err (!%p640_p2)
}
  0x25   : > { %s697_s26 = smov 256   ;;  %s698_s27 = smov 16  }
  0x26   : > { %558 = dma.hbm_to_vmem [thread:$0]  (!%p781_p9), %s777_s30, 1024, %s785_s5, %s787_s7, %s697_s26, %s697_s26, %s698_s27  }
  0x27   : > { %p529_p11 = scmp.ge.s32.totalorder %s694_s17, 1  ;;  %p171_p13 = scmp.lt.s32.totalorder %s694_s17, 3 }
  0x29   : > { %p172_p3 = pnand %p529_p11, %p171_p13 }
  0x2a   : > { %s177_s28 = sand.u32 (!%p172_p3), 1, %s678_s13  }
  0x2b   : > { %175 = sbr.rel (%p172_p3) target bundleno = 441 (0x1b9), region = 32  ;;  %s530_s29 = sshll.u32 (!%p172_p3), %s177_s28, 6 }
  0x2c   : > { %s178_s4 = scalar_lea.sflag (!%p172_p3), [#allocation3], %s177_s28  ;;  %s181_s8 = scalar_lea.vmem (!%p172_p3), [#allocation2], %s530_s29 }
  0x32   : > { %669 = dma.done.wait (%p764_p7), %s178_s4, 1024  }
  0x33   : > { %671 = vsyncadd (%p764_p7), %s178_s4, 4294966272  ;;  %v699_v0 = vmov 0.0   ;;  %v700_v1 = vmov 0   ;;  %v219_v2 = vld [vmem:[%s181_s8 + $0x8] sm:$0xff]  ;;  %v221_v3 = vld [vmem:[%s181_s8 + $0x18] sm:$0xff]  ;;  %vm254_vm0 = vcmask 261120   ;;  %v357_v58 = vlaneseq }
  0x34   : > { %331 = vmatprep.mubr.f32.mxu0 %v699_v0  ;;  %343 = vmatprep.mubr.f32.mxu1 %v699_v0  ;;  %v218_v4 = vld [vmem:[%s181_s8] sm:$0xff]  ;;  %v541_v5 = vpack.c.bf16 %v221_v3, %v219_v2  ;;  %v220_v6 = vld [vmem:[%s181_s8 + $0x10] sm:$0xff]  ;;  %v223_v7 = vld [vmem:[%s181_s8 + $0x28] sm:$0xff]  ;;  %p209_p7 = scmp.lt.s32.totalorder %s686_s15, 1  ;;  %vm419_vm3 = vcmask 64512  }
  0x35   : > { %612 = vset.pattern.permute.xlu0 %v700_v1  ;;  %613 = vset.pattern.permute.xlu1 %v700_v1  ;;  %v225_v8 = vld [vmem:[%s181_s8 + $0x38] sm:$0xff]  ;;  %v543_v9 = vpack.c.bf16 %v220_v6, %v218_v4  ;;  %v222_v11 = vld [vmem:[%s181_s8 + $0x20] sm:$0xff]  ;;  %v224_v12 = vld [vmem:[%s181_s8 + $0x30] sm:$0xff]  ;;  %v358_v59 = vand.u32 127, %v357_v58 }
  0x36   : > { %v545_v10 = vpack.c.bf16 %v225_v8, %v223_v7  ;;  %542 = vmatprep.subr.bf16.mxu0 %v541_v5  ;;  %549 = vmatprep.subr.bf16.mxu1 %v541_v5  ;;  %v547_v13 = vpack.c.bf16 %v224_v12, %v222_v11  ;;  %v230_v14 = vld [vmem:[%s883_s2] sm:$0xff]  ;;  %v232_v15 = vld [vmem:[%s883_s2 + $0x10] sm:$0xff]  ;;  %v231_v16 = vld [vmem:[%s883_s2 + $0x8] sm:$0xff]  ;;  %s896_s15 = smov (!%p209_p7, %s686_s15), 1 }
  0x37   : > { %544 = vmatpush1.bf16.msra.mxu0 %v543_v9  ;;  %551 = vmatpush1.bf16.msra.mxu1 %v543_v9  ;;  %v233_v17 = vld [vmem:[%s883_s2 + $0x18] sm:$0xff]  ;;  %v226_v18 = vld [vmem:[%s882_s1] sm:$0xff]  ;;  %v228_v19 = vld [vmem:[%s882_s1 + $0x10] sm:$0xff]  ;;  %vm405_vm1 = vcmp.eq.s32.totalorder %v358_v59, 0  ;;  %s540_s28 = sshll.u32 %s896_s15, 5  ;;  %vm410_vm2 = vcmp.eq.s32.totalorder %v358_v59, 1 }
  0x38   : > { %546 = vmatprep.subr.bf16.mxu0 %v545_v10  ;;  %550 = vmatprep.subr.bf16.mxu1 %v545_v10  ;;  %v227_v20 = vld [vmem:[%s882_s1 + $0x8] sm:$0xff]  ;;  %v229_v21 = vld [vmem:[%s882_s1 + $0x18] sm:$0xff]  ;;  %s217_s8 = scalar_lea.vmem %s884_s3, %s540_s28 }
  0x39   : > { %236 = vperm.xlu0 %612, %v230_v14   ;;  %246 = vperm.xlu1 %613, %v232_v15  }
  0x3b   : > { %548 = vmatpush1.bf16.msra.mxu0 %v547_v13  ;;  %552 = vmatpush1.bf16.msra.mxu1 %v547_v13 }
  0x3d   : > { %241 = vperm.xlu0 %612, %v231_v16   ;;  %251 = vperm.xlu1 %613, %v233_v17  }
  0x3e   : > { %533 = vmatmul.mubr.msk.f32.vlgmr.msra.gmra.mrb[0].mxu0 %vm254_vm0, %v226_v18  ;;  %535 = vmatmul.mubr.msk.f32.vlgmr.msra.gmra.mrb[0].mxu1 %vm254_vm0, %v228_v19 }
  0x3f   : > { %337 = vmatprep.mubr.f32.mxu0 %v699_v0  ;;  %349 = vmatprep.mubr.f32.mxu1 %v699_v0 }
  0x42   : > { %534 = vmatmul.mubr.msk.f32.gmra.mrb[2].mxu0 %vm254_vm0, %v227_v20  ;;  %536 = vmatmul.mubr.msk.f32.gmra.mrb[2].mxu1 %vm254_vm0, %v229_v21 }
  0xb8   : > { %v247_v22 = vpop.permute.xlu1 %246  ;;  %v237_v23 = vpop.permute.xlu0 %236 }
  0xbc   : > { %v252_v32 = vpop.permute.xlu1 %251  ;;  %v242_v34 = vpop.permute.xlu0 %241 }
 0x111   : > { %v333_v24 = vpop.f32.mrb[0].mxu0  ;;  %v345_v25 = vpop.f32.mrb[0].mxu1 }
 0x112   : > { %v334_v26 = vadd.f32 %v333_v24, %v237_v23  ;;  %v335_v27 = vpop.f32.mrb[1].mxu0  ;;  %v346_v28 = vadd.f32 %v345_v25, %v247_v22  ;;  %v347_v29 = vpop.f32.mrb[1].mxu1 }
 0x113   : > { %v336_v30 = vadd.f32 %v335_v27, %v237_v23  ;;  %v348_v31 = vadd.f32 %v347_v29, %v247_v22 }
 0x114   : > { %v385_v33 = vmul.f32 %v334_v26, %v334_v26  ;;  %v389_v35 = vmul.f32 %v346_v28, %v346_v28 }
 0x115   : > { %v386_v36 = vmul.f32 %v336_v30, %v336_v30  ;;  %v390_v37 = vmul.f32 %v348_v31, %v348_v31  ;;  %v339_v38 = vpop.f32.mrb[2].mxu0  ;;  %v351_v39 = vpop.f32.mrb[2].mxu1  ;;  %v373_v40 = vadd.f32 %v336_v30, %v334_v26  ;;  %v379_v41 = vadd.f32 %v348_v31, %v346_v28 }
 0x116   : > { %v340_v42 = vadd.f32 %v339_v38, %v242_v34  ;;  %v352_v43 = vadd.f32 %v351_v39, %v252_v32  ;;  %v341_v44 = vpop.f32.mrb[3].mxu0  ;;  %v353_v45 = vpop.f32.mrb[3].mxu1 }
 0x117   : > { %v342_v46 = vadd.f32 %v341_v44, %v242_v34  ;;  %v354_v47 = vadd.f32 %v353_v45, %v252_v32  ;;  %374 = vadd.xlane.f32.xlu0 %v373_v40  ;;  %v393_v48 = vadd.f32 %v386_v36, %v385_v33  ;;  %v399_v49 = vadd.f32 %v390_v37, %v389_v35 }
 0x118   : > { %v387_v50 = vmul.f32 %v340_v42, %v340_v42  ;;  %v391_v51 = vmul.f32 %v352_v43, %v352_v43 }
 0x119   : > { %v388_v52 = vmul.f32 %v342_v46, %v342_v46  ;;  %v392_v53 = vmul.f32 %v354_v47, %v354_v47  ;;  %394 = vadd.xlane.f32.xlu1 %v393_v48  ;;  %v376_v54 = vadd.f32 %v342_v46, %v340_v42  ;;  %v382_v55 = vadd.f32 %v354_v47, %v352_v43 }
 0x11b   : > { %380 = vadd.xlane.f32.xlu0 %v379_v41  ;;  %v396_v56 = vadd.f32 %v388_v52, %v387_v50  ;;  %v402_v57 = vadd.f32 %v392_v53, %v391_v51 }
 0x11d   : > { %377 = vadd.xlane.f32.xlu1 %v376_v54 }
 0x11f   : > { %383 = vadd.xlane.f32.xlu0 %v382_v55 }
 0x121   : > { %400 = vadd.xlane.f32.xlu1 %v399_v49 }
 0x123   : > { %397 = vadd.xlane.f32.xlu0 %v396_v56 }
 0x127   : > { %403 = vadd.xlane.f32.xlu0 %v402_v57 }
 0x1a4   : > { %v375_v60 = vpop.xlane.xlu0 %374 }
 0x1a5   : > { %v406_v62 = vsel %vm405_vm1, %v375_v60, 0.0 }
 0x1a6   : > { %v395_v61 = vpop.xlane.xlu1 %394 }
 0x1a7   : > { %v411_v63 = vsel %vm410_vm2, %v395_v61, 0.0 }
 0x1a8   : > { %v415_v0 = vadd.f32 %v411_v63, %v406_v62  ;;  %v381_v1 = vpop.xlane.xlu0 %380 }
 0x1a9   : > { %v408_v5 = vsel %vm405_vm1, %v381_v1, 0.0 }
 0x1aa   : > { %420 = vst.msk [vmem:[%s217_s8] sm:$0xff] %vm419_vm3, %v415_v0  ;;  %v378_v2 = vpop.xlane.xlu1 %377 }
 0x1ab   : > { %v407_v9 = vsel %vm405_vm1, %v378_v2, 0.0 }
 0x1ac   : > { %v384_v3 = vpop.xlane.xlu0 %383 }
 0x1ad   : > { %v409_v13 = vsel %vm405_vm1, %v384_v3, 0.0 }
 0x1ae   : > { %v401_v4 = vpop.xlane.xlu1 %400 }
 0x1af   : > { %v413_v6 = vsel %vm410_vm2, %v401_v4, 0.0 }
 0x1b0   : > { %v417_v7 = vadd.f32 %v413_v6, %v408_v5  ;;  %v398_v8 = vpop.xlane.xlu0 %397 }
 0x1b1   : > { %v412_v10 = vsel %vm410_vm2, %v398_v8, 0.0 }
 0x1b2   : > { %422 = vst.msk [vmem:[%s217_s8 + $0x10] sm:$0xff] %vm419_vm3, %v417_v7  ;;  %v416_v11 = vadd.f32 %v412_v10, %v407_v9 }
 0x1b4   : > { %421 = vst.msk [vmem:[%s217_s8 + $0x8] sm:$0xff] %vm419_vm3, %v416_v11  ;;  %v404_v12 = vpop.xlane.xlu0 %403 }
 0x1b5   : > { %v414_v14 = vsel %vm410_vm2, %v404_v12, 0.0 }
 0x1b6   : > { %v418_v15 = vadd.f32 %v414_v14, %v409_v13 }
 0x1b8   : > { %423 = vst.msk [vmem:[%s217_s8 + $0x18] sm:$0xff] %vm419_vm3, %v418_v15 }
 0x1b9 PF: > { %s16_s17 = sadd.s32 1, %s694_s17   ;;  %s888_s12 = smov %s678_s13 }
 0x1ba   : > { %p13_p9 = scmp.ge.s32.totalorder %s16_s17, 4   ;;  %s889_s13 = smov %s682_s14 }
 0x1bb   : > { %s890_s14 = smov %s770_s24  ;;  %s891_s15 = smov %s690_s16 }
 0x1bc   : > { %s892_s16 = smov %s894_s19  ;;  %15 = sbr.rel (!%p13_p9) target bundleno = 4 (0x4), region = 72 }
 0x1c3   :  { %453 = vsyncpa [#allocation3], 1 }
 0x1c4   :  { %455 = vsyncpa [#allocation3 + $0x1], 1 }

</bundles_post_ra>
